<compile_context>
chip_gen: v7x
topology: tpu7x:2x2x1
jax: 0.10.0
libtpu: 0.0.40
codegen_flags: <defaults>
</compile_context>

<pallas_src>
from functools import partial

import jax
import jax.numpy as jnp
from jax import lax
from jax.experimental import pallas as pl
from jax.experimental.pallas import tpu as pltpu


# ----------------------------------------------------------------------------
# Kernel: one grid step scores a (tile_b, D) query block against a (tile_n, D)
# entity slab.  MXU consumes the RHS transposed via dot_general (no XLU .T).
# ----------------------------------------------------------------------------
def _distmult_score_kernel(q_ref, ent_ref, out_ref):
    s = lax.dot_general(
        q_ref[...], ent_ref[...],
        dimension_numbers=(((1,), (1,)), ((), ())),   # contract D vs D
        preferred_element_type=jnp.float32,
    )                                                 # (tile_b, tile_n) f32
    out_ref[...] = jax.nn.sigmoid(s).astype(out_ref.dtype)


def distmult_scores(q, entity_table, *, tile_b=128, tile_n=512):
    """sigmoid(q @ entity_table.T) via a single fused Pallas sweep.

    q            : (B, D) float32 query embeddings (e1_emb * r_emb)
    entity_table : (E, D) float32
    returns      : (B, E) float32
    """
    B, D = q.shape
    E, D2 = entity_table.shape
    assert D == D2

    # Pad batch / entity counts up to tile multiples (handles ragged sizes).
    B_pad = pl.cdiv(B, tile_b) * tile_b
    E_pad = pl.cdiv(E, tile_n) * tile_n

    # Stream both operands as bf16 (mem-bound kernel: halves HBM bytes and is
    # the MXU's native input rate); accumulation stays f32.
    q_p = jnp.pad(q, ((0, B_pad - B), (0, 0))).astype(jnp.bfloat16)
    ent_p = jnp.pad(entity_table, ((0, E_pad - E), (0, 0))).astype(jnp.bfloat16)

    nb, ne = B_pad // tile_b, E_pad // tile_n
    cost = pl.CostEstimate(
        flops=2 * B_pad * D * E_pad,
        transcendentals=B_pad * E_pad,                       # sigmoid exp
        bytes_accessed=q_p.size * 2 + ent_p.size * 2 * nb + B_pad * E_pad * 4,
    )

    out = pl.pallas_call(
        _distmult_score_kernel,
        out_shape=jax.ShapeDtypeStruct((B_pad, E_pad), jnp.float32),
        grid_spec=pltpu.PrefetchScalarGridSpec(
            num_scalar_prefetch=0,
            grid=(nb, ne),
            in_specs=[
                pl.BlockSpec((tile_b, D), lambda i, j: (i, 0)),   # query block
                pl.BlockSpec((tile_n, D), lambda i, j: (j, 0)),   # entity slab
            ],
            out_specs=pl.BlockSpec((tile_b, tile_n), lambda i, j: (i, j)),
        ),
        compiler_params=pltpu.CompilerParams(
            dimension_semantics=("parallel", "parallel"),
        ),
        cost_estimate=cost,
    )(q_p, ent_p)

    return out[:B, :E]


# ----------------------------------------------------------------------------
# Runner-equivalent forward.  Runner.forward scores each example against all
# entities and concatenates (dummy-padded rows of ragged mini-batches are
# sliced away), so fusing every mini-batch into one table sweep is exactly
# equivalent and far faster.
# ----------------------------------------------------------------------------
@partial(jax.jit, static_argnames=("batch_size",))
def runner_forward(e1_ids, r_ids, entity_table, relation_table, batch_size=8):
    del batch_size  # mini-batch carving is a perf artifact of the torch loop
    # Embedding gathers + DistMult query product are glue (plain JAX).
    q = entity_table[e1_ids] * relation_table[r_ids]          # (B, D)
    return distmult_scores(q, entity_table)                   # (B, E)


if __name__ == "__main__":
    # Small synthetic KG; entity count deliberately NOT a multiple of 128 to
    # exercise the padding path, example count forces batch-tile padding too.
    num_entities = 1000
    num_relations = 16
    entity_dim = 128          # = relation_dim for DistMult
    batch_size = 8            # Runner's dev_batch_size (semantically irrelevant now)
    num_examples = 300

    key = jax.random.PRNGKey(0)
    k_e, k_r, k_ids_e, k_ids_r = jax.random.split(key, 4)

    entity_table = (jax.random.normal(k_e, (num_entities, entity_dim), jnp.float32)
                    * (1.0 / jnp.sqrt(entity_dim)))
    relation_table = (jax.random.normal(k_r, (num_relations, entity_dim), jnp.float32)
                      * (1.0 / jnp.sqrt(entity_dim)))

    e1_ids = jax.random.randint(k_ids_e, (num_examples,), 0, num_entities, jnp.int32)
    r_ids = jax.random.randint(k_ids_r, (num_examples,), 0, num_relations, jnp.int32)

    # Pallas-backed forward.
    scores = runner_forward(e1_ids, r_ids, entity_table, relation_table,
                            batch_size=batch_size)
    scores = jax.block_until_ready(scores)

    # Pure-JAX reference on the same bf16-cast operands (kernel streams bf16,
    # accumulates in f32 on the MXU).
    q_bf = (entity_table[e1_ids] * relation_table[r_ids]
            ).astype(jnp.bfloat16).astype(jnp.float32)
    ent_bf = entity_table.astype(jnp.bfloat16).astype(jnp.float32)
    ref = jax.nn.sigmoid(
        jnp.einsum("bd,ed->be", q_bf, ent_bf, precision=lax.Precision.HIGHEST))

    assert scores.shape == (num_examples, num_entities), scores.shape
    max_err = float(jnp.max(jnp.abs(scores - ref)))
    assert jnp.allclose(scores, ref, atol=1e-4, rtol=1e-4), max_err

    # TODO(synk): Runner.loss (BCE + label smoothing) and the training /
    # checkpointing loop are not part of forward() and are left in plain JAX.

    print("KERNEL_OK")
</pallas_src>

<mosaic_0001>
module attributes {stable_mosaic.version = 11 : i64} {
  func.func @_distmult_score_kernel(%arg0: i32, %arg1: i32, %arg2: memref<128x128xbf16, #tpu.memory_space<vmem>>, %arg3: memref<512x128xbf16, #tpu.memory_space<vmem>>, %arg4: memref<128x512xf32, #tpu.memory_space<vmem>>) attributes {dimension_semantics = [#tpu.dimension_semantics<parallel>, #tpu.dimension_semantics<parallel>], iteration_bounds = array<i64: 3, 2>, scalar_prefetch = 0 : i64, scratch_operands = 0 : i64, tpu.core_type = #tpu.core_type<tc>, window_params = [{transform_indices = @transform_0, window_bounds = array<i64: 128, 128>}, {transform_indices = @transform_1, window_bounds = array<i64: 512, 128>}, {transform_indices = @transform_2, window_bounds = array<i64: 128, 512>}]} {
    %c0 = arith.constant 0 : index
    %c0_0 = arith.constant 0 : index
    %0 = vector.load %arg2[%c0, %c0_0] : memref<128x128xbf16, #tpu.memory_space<vmem>>, vector<128x128xbf16>
    %c0_1 = arith.constant 0 : index
    %c0_2 = arith.constant 0 : index
    %1 = vector.load %arg3[%c0_1, %c0_2] : memref<512x128xbf16, #tpu.memory_space<vmem>>, vector<512x128xbf16>
    %cst = arith.constant dense<0.000000e+00> : vector<128x512xf32>
    %2 = tpu.matmul %0, %1, %cst {dimension_numbers = #tpu.dot_dimension_numbers<[1], [1], [0], [0], [0, 0, 1, 0], [], []>} : vector<128x128xbf16>, vector<512x128xbf16>, vector<128x512xf32> -> vector<128x512xf32>
    %3 = arith.negf %2 : vector<128x512xf32>
    %4 = math.exp %3 : vector<128x512xf32>
    %cst_3 = arith.constant 1.000000e+00 : f32
    %5 = vector.broadcast %cst_3 : f32 to vector<128x512xf32>
    %6 = arith.addf %5, %4 : vector<128x512xf32>
    %7 = arith.divf %5, %6 : vector<128x512xf32>
    %c0_4 = arith.constant 0 : index
    %c0_5 = arith.constant 0 : index
    %8 = vector.load %arg4[%c0_4, %c0_5] : memref<128x512xf32, #tpu.memory_space<vmem>>, vector<128x512xf32>
    tpu.vector_store %arg4[%c0_4, %c0_5], %7 {strides = array<i32>} : memref<128x512xf32, #tpu.memory_space<vmem>>, vector<128x512xf32>,
    return
  }
  func.func @transform_0(%arg0: i32, %arg1: i32) -> (i32, i32) {
    %c0_i32 = arith.constant 0 : i32
    %c0_i32_0 = arith.constant 0 : i32
    return %arg0, %c0_i32 : i32, i32
  }
  func.func @transform_1(%arg0: i32, %arg1: i32) -> (i32, i32) {
    %c0_i32 = arith.constant 0 : i32
    %c0_i32_0 = arith.constant 0 : i32
    return %arg1, %c0_i32 : i32, i32
  }
  func.func @transform_2(%arg0: i32, %arg1: i32) -> (i32, i32) {
    %c0_i32 = arith.constant 0 : i32
    return %arg0, %arg1 : i32, i32
  }
}

</mosaic_0001>

<bundles_post_ra>
// kernel: runner_forward.1
= control target key start
LH: loop header
LB: loop body
LE: loop exit
PB: predicated region body
PF: predicated region fallthrough
CT: control target
= control target key end

     0   :  { %s2015_s9 = smov 0   ;;  %s2017_s10 = smov 0   ;;  %s2474_s0 = inlined_call_operand.vmem [shape: bf16[384,128], index: 0, kind: input, shape index: {}]   ;;  %s2475_s1 = inlined_call_operand.vmem [shape: bf16[1024,128], index: 1, kind: input, shape index: {}]   ;;  %s2476_s2 = inlined_call_operand.vmem [shape: f32[384,1024], index: 2, kind: output, shape index: {}]  }
   0x1   :  { %s2019_s11 = smov 0   ;;  %s2021_s12 = smov 0  }
   0x2   :  { %s2023_s13 = smov 0   ;;  %s2025_s14 = smov 0  }
   0x3   :  { %s2027_s15 = smov 0  }
   0x4 LB: > { %s21_s16 = sadd.s32 1, %s1990_s13  ;;  %s24_s17 = sadd.s32 1, %s1994_s14  ;;  %s1998_s15 = sphi %s2027_s15, %s12_s15   ;;  %s1994_s14 = sphi %s2025_s14, %s2483_s14   ;;  %s1990_s13 = sphi %s2023_s13, %s2482_s13   ;;  %s1986_s12 = sphi %s2021_s12, %s2481_s12   ;;  %s1982_s11 = sphi %s2019_s11, %s2480_s11   ;;  %s1978_s10 = sphi %s2017_s10, %s2479_s10   ;;  %s1974_s9 = sphi %s2015_s9, %s2478_s9  }
   0x5   : > { %p22_p0 = scmp.ge.s32.totalorder %s21_s16, 2  ;;  %s1406_s18 = sadd.s32 4294967295, %s1998_s15  }
   0x6   : > { %p95_p1 = scmp.ne.s32.totalorder %s1978_s10, %s1974_s9  ;;  %p96_p2 = scmp.eq.s32.totalorder %s1406_s18, 5 }
   0x7   : > { %s2485_s16 = smov (%p22_p0, %s21_s16), 0  ;;  %s2487_s17 = smov (!%p22_p0, %s24_s17), %s1994_s14 }
   0x8   : > { %s81_s19 = ssub.s32 %s1990_s13, %s2485_s16  ;;  %p26_p3 = scmp.ge.s32.totalorder %s2487_s17, 3 }
   0x9   : > { %p1410_p4 = scmp.ge.s32.totalorder %s1998_s15, 1  ;;  %p2061_p5 = por %p96_p2, %p95_p1 }
   0xa   : > { %p138_p6 = scmp.lt.s32.totalorder %s1998_s15, 7  ;;  %s2489_s17 = smov (%p26_p3, %s2487_s17), 0 }
   0xb   : > { %s80_s21 = ssub.s32 %s1994_s14, %s2489_s17  ;;  %s85_s23 = sadd.s32 1, %s1978_s10 }
   0xc   : > { %p139_p7 = pnand %p1410_p4, %p138_p6  ;;  %s82_s22 = sor.u32 %s81_s19, %s80_s21 }
   0xd   : > { %p83_p8 = scmp.eq.s32.totalorder %s82_s22, 0  ;;  %s1414_s25 = sshll.u32 (!%p139_p7), %s1982_s11, 6 }
   0xe   : > { %142 = sbr.rel (%p139_p7) target bundleno = 454 (0x1c6), region = 28  ;;  %p171_p9 = scmp.lt.s32.totalorder (!%p139_p7), %s1414_s25, 127 }
   0xf   : > { %s2072_s24 = scalar_select %p83_p8, %s1978_s10, %s85_s23  }
  0x10   : > { %s1412_s30 = sshll.u32 (!%p139_p7), %s1986_s12, 4  ;;  %s161_s7 = sand.u32 (!%p139_p7), 1, %s1974_s9  }
  0x11   : > { %p165_p10 = scmp.lt.s32.totalorder (!%p139_p7), %s1412_s30, 47  ;;  %s1411_s8 = sshll.u32 (!%p139_p7), %s161_s7, 9 }
  0x12   : > { %s2137_s9 = scalar_lea.vmem (!%p139_p7), [#allocation2], %s1411_s8 }
  0x15   : > { %s2491_s25 = smov (!%p171_p9, %s1414_s25), 127  ;;  %s2493_s30 = smov (!%p165_p10, %s1412_s30), 47 }
  0x16   : > { %s1415_s26 = sshll.u32 %s2491_s25, 2  ;;  %s1413_s3 = sshll.u32 %s2493_s30, 2 }
  0x17   : > { %s2078_s29 = scalar_lea.vmem %s2475_s1, %s1415_s26  ;;  %s2102_s6 = scalar_lea.vmem %s2474_s0, %s1413_s3 }
  0x18   : > { %v1648_v0 = vld [vmem:[%s2078_s29 + $0x40] sm:$0xff]   ;;  %v1652_v4 = vld [vmem:[%s2078_s29 + $0x48] sm:$0xff]   ;;  %v1656_v8 = vld [vmem:[%s2078_s29 + $0x50] sm:$0xff]   ;;  %s1522_s18 = sshll.u32 (%p2061_p5), %s1982_s11, 2  ;;  %s1527_s19 = sshll.u32 (%p2061_p5), %s1986_s12, 7 }
  0x19   : > { %v1649_v1 = vld [vmem:[%s2078_s29 + $0xc0] sm:$0xff]   ;;  %1528 = vmatprep.subr.bf16.mxu0 %v1648_v0  ;;  %v1653_v5 = vld [vmem:[%s2078_s29 + $0xc8] sm:$0xff]   ;;  %v1657_v9 = vld [vmem:[%s2078_s29 + $0xd0] sm:$0xff]   ;;  %s1183_s20 = sadd.s32 (%p2061_p5), %s1527_s19, %s1522_s18 }
  0x1a   : > { %v1650_v2 = vld [vmem:[%s2078_s29] sm:$0xff]   ;;  %1560 = vmatprep.subr.bf16.mxu1 %v1649_v1  ;;  %v1654_v6 = vld [vmem:[%s2078_s29 + $0x8] sm:$0xff]   ;;  %v1658_v10 = vld [vmem:[%s2078_s29 + $0x10] sm:$0xff]   ;;  %s1524_s21 = sshll.u32 (%p2061_p5), %s1183_s20, 3 }
  0x1b   : > { %v1651_v3 = vld [vmem:[%s2078_s29 + $0x80] sm:$0xff]   ;;  %1529 = vmatpush3.bf16.xpose.msra.mxu0 %v1650_v2  ;;  %v1655_v7 = vld [vmem:[%s2078_s29 + $0x88] sm:$0xff]   ;;  %v1659_v11 = vld [vmem:[%s2078_s29 + $0x90] sm:$0xff]   ;;  %s2332_s25 = scalar_lea.vmem (%p2061_p5), %s2476_s2, %s1524_s21 }
  0x1c   : > { %1561 = vmatpush3.bf16.xpose.msra.mxu1 %v1651_v3  ;;  %1530 = vmatprep.subr.bf16.mxu0 %v1652_v4  ;;  %v1660_v12 = vld [vmem:[%s2078_s29 + $0x58] sm:$0xff]   ;;  %v1664_v16 = vld [vmem:[%s2078_s29 + $0x60] sm:$0xff]   ;;  %v1668_v21 = vld [vmem:[%s2078_s29 + $0x68] sm:$0xff]  }
  0x1d   : > { %1562 = vmatprep.subr.bf16.mxu1 %v1653_v5  ;;  %v1661_v13 = vld [vmem:[%s2078_s29 + $0xd8] sm:$0xff]   ;;  %v1665_v17 = vld [vmem:[%s2078_s29 + $0xe0] sm:$0xff]   ;;  %v1669_v22 = vld [vmem:[%s2078_s29 + $0xe8] sm:$0xff]  }
  0x1e   : > { %v1662_v14 = vld [vmem:[%s2078_s29 + $0x18] sm:$0xff]   ;;  %v1666_v18 = vld [vmem:[%s2078_s29 + $0x20] sm:$0xff]   ;;  %v1670_v23 = vld [vmem:[%s2078_s29 + $0x28] sm:$0xff]  }
  0x1f   : > { %v1663_v15 = vld [vmem:[%s2078_s29 + $0x98] sm:$0xff]   ;;  %v1667_v19 = vld [vmem:[%s2078_s29 + $0xa0] sm:$0xff]   ;;  %v1671_v24 = vld [vmem:[%s2078_s29 + $0xa8] sm:$0xff]  }
  0x20   : > { %v1680_v20 = vld [vmem:[%s2102_s6] sm:$0xff]   ;;  %v1672_v25 = vld [vmem:[%s2078_s29 + $0x70] sm:$0xff]   ;;  %v1676_v29 = vld [vmem:[%s2078_s29 + $0x78] sm:$0xff]  }
  0x21   : > { %1544 = vmatprep.mubr.bf16.mxu0 %v1680_v20  ;;  %1576 = vmatprep.mubr.bf16.mxu1 %v1680_v20  ;;  %v1673_v26 = vld [vmem:[%s2078_s29 + $0xf0] sm:$0xff]   ;;  %v1677_v30 = vld [vmem:[%s2078_s29 + $0xf8] sm:$0xff]   ;;  %v1681_v33 = vld [vmem:[%s2102_s6 + $0x8] sm:$0xff]  }
  0x22   : > { %v1674_v27 = vld [vmem:[%s2078_s29 + $0x30] sm:$0xff]   ;;  %v1678_v31 = vld [vmem:[%s2078_s29 + $0x38] sm:$0xff]   ;;  %v1684_v36 = vld [vmem:[%s2102_s6 + $0x20] sm:$0xff]  }
  0x23   : > { %1531 = vmatpush3.bf16.xpose.msra.mxu0 %v1654_v6  ;;  %v1675_v28 = vld [vmem:[%s2078_s29 + $0xb0] sm:$0xff]   ;;  %v1679_v32 = vld [vmem:[%s2078_s29 + $0xb8] sm:$0xff]   ;;  %v1685_v37 = vld [vmem:[%s2102_s6 + $0x28] sm:$0xff]  }
  0x24   : > { %1563 = vmatpush3.bf16.xpose.msra.mxu1 %v1655_v7  ;;  %1532 = vmatprep.subr.bf16.mxu0 %v1656_v8  ;;  %v1682_v34 = vld [vmem:[%s2102_s6 + $0x10] sm:$0xff]   ;;  %v1683_v35 = vld [vmem:[%s2102_s6 + $0x18] sm:$0xff]  }
  0x25   : > { %1564 = vmatprep.subr.bf16.mxu1 %v1657_v9  ;;  %v1686_v38 = vld [vmem:[%s2102_s6 + $0x30] sm:$0xff]   ;;  %v1687_v39 = vld [vmem:[%s2102_s6 + $0x38] sm:$0xff]  }
  0x2b   : > { %1533 = vmatpush3.bf16.xpose.msra.mxu0 %v1658_v10 }
  0x2c   : > { %1565 = vmatpush3.bf16.xpose.msra.mxu1 %v1659_v11  ;;  %1534 = vmatprep.subr.bf16.mxu0 %v1660_v12 }
  0x2d   : > { %1566 = vmatprep.subr.bf16.mxu1 %v1661_v13 }
  0x33   : > { %1535 = vmatpush3.bf16.xpose.msra.mxu0 %v1662_v14 }
  0x34   : > { %1567 = vmatpush3.bf16.xpose.msra.mxu1 %v1663_v15  ;;  %1536 = vmatprep.subr.bf16.mxu0 %v1664_v16 }
  0x35   : > { %1568 = vmatprep.subr.bf16.mxu1 %v1665_v17 }
  0x3b   : > { %1537 = vmatpush3.bf16.xpose.msra.mxu0 %v1666_v18 }
  0x3c   : > { %1569 = vmatpush3.bf16.xpose.msra.mxu1 %v1667_v19  ;;  %1538 = vmatprep.subr.bf16.mxu0 %v1668_v21 }
  0x3d   : > { %1570 = vmatprep.subr.bf16.mxu1 %v1669_v22 }
  0x43   : > { %1539 = vmatpush3.bf16.xpose.msra.mxu0 %v1670_v23 }
  0x44   : > { %1571 = vmatpush3.bf16.xpose.msra.mxu1 %v1671_v24  ;;  %1540 = vmatprep.subr.bf16.mxu0 %v1672_v25 }
  0x45   : > { %1572 = vmatprep.subr.bf16.mxu1 %v1673_v26 }
  0x4b   : > { %1541 = vmatpush3.bf16.xpose.msra.mxu0 %v1674_v27 }
  0x4c   : > { %1573 = vmatpush3.bf16.xpose.msra.mxu1 %v1675_v28  ;;  %1542 = vmatprep.subr.bf16.mxu0 %v1676_v29 }
  0x4d   : > { %1574 = vmatprep.subr.bf16.mxu1 %v1677_v30 }
  0x53   : > { %1543 = vmatpush3.bf16.xpose.msra.mxu0 %v1678_v31 }
  0x54   : > { %1575 = vmatpush3.bf16.xpose.msra.mxu1 %v1679_v32 }
  0x5a   : > { %1545 = vmatmul.mubr.bf16.vlgmr.msra.gmra.mrb[0].mxu0 %v1680_v20 }
  0x5b   : > { %1577 = vmatmul.mubr.bf16.vlgmr.msra.gmra.mrb[0].mxu1 %v1680_v20  ;;  %1546 = vmatprep.mubr.bf16.mxu0 %v1681_v33 }
  0x5c   : > { %1578 = vmatprep.mubr.bf16.mxu1 %v1681_v33 }
  0x62   : > { %1547 = vmatmul.mubr.bf16.gmra.mrb[4].mxu0 %v1681_v33 }
  0x63   : > { %1579 = vmatmul.mubr.bf16.gmra.mrb[4].mxu1 %v1681_v33  ;;  %1548 = vmatprep.mubr.bf16.mxu0 %v1682_v34 }
  0x64   : > { %1580 = vmatprep.mubr.bf16.mxu1 %v1682_v34 }
  0x6a   : > { %1549 = vmatmul.mubr.bf16.gmra.mrb[8].mxu0 %v1682_v34 }
  0x6b   : > { %1581 = vmatmul.mubr.bf16.gmra.mrb[8].mxu1 %v1682_v34  ;;  %1550 = vmatprep.mubr.bf16.mxu0 %v1683_v35 }
  0x6c   : > { %1582 = vmatprep.mubr.bf16.mxu1 %v1683_v35 }
  0x72   : > { %1551 = vmatmul.mubr.bf16.gmra.mrb[12].mxu0 %v1683_v35 }
  0x73   : > { %1583 = vmatmul.mubr.bf16.gmra.mrb[12].mxu1 %v1683_v35  ;;  %1552 = vmatprep.mubr.bf16.mxu0 %v1684_v36 }
  0x74   : > { %1584 = vmatprep.mubr.bf16.mxu1 %v1684_v36 }
  0x7a   : > { %1553 = vmatmul.mubr.bf16.gmra.mrb[16].mxu0 %v1684_v36 }
  0x7b   : > { %1585 = vmatmul.mubr.bf16.gmra.mrb[16].mxu1 %v1684_v36  ;;  %1554 = vmatprep.mubr.bf16.mxu0 %v1685_v37 }
  0x7c   : > { %1586 = vmatprep.mubr.bf16.mxu1 %v1685_v37 }
  0x82   : > { %1555 = vmatmul.mubr.bf16.gmra.mrb[20].mxu0 %v1685_v37 }
  0x83   : > { %1587 = vmatmul.mubr.bf16.gmra.mrb[20].mxu1 %v1685_v37  ;;  %1556 = vmatprep.mubr.bf16.mxu0 %v1686_v38 }
  0x84   : > { %1588 = vmatprep.mubr.bf16.mxu1 %v1686_v38 }
  0x8a   : > { %1557 = vmatmul.mubr.bf16.gmra.mrb[24].mxu0 %v1686_v38 }
  0x8b   : > { %1589 = vmatmul.mubr.bf16.gmra.mrb[24].mxu1 %v1686_v38  ;;  %1558 = vmatprep.mubr.bf16.mxu0 %v1687_v39 }
  0x8c   : > { %1590 = vmatprep.mubr.bf16.mxu1 %v1687_v39 }
  0x92   : > { %1559 = vmatmul.mubr.bf16.gmra.mrb[28].mxu0 %v1687_v39 }
  0x93   : > { %1591 = vmatmul.mubr.bf16.gmra.mrb[28].mxu1 %v1687_v39 }
 0x12d   : > { %v533_v40 = vpop.f32.mrb[0].mxu0 }
 0x12e   : > { %v1456_v41 = vmul.f32 -1.442695, %v533_v40  ;;  %v646_v42 = vpop.f32.mrb[0].mxu1  ;;  %v535_v43 = vpop.f32.mrb[1].mxu0 }
 0x12f   : > { %v1458_v44 = vmul.f32 -1.442695, %v646_v42  ;;  %v1457_v45 = vmul.f32 -1.442695, %v535_v43  ;;  %v648_v46 = vpop.f32.mrb[1].mxu1  ;;  %v537_v47 = vpop.f32.mrb[2].mxu0 }
 0x130   : > { %1688 = vpow2.f32 %v1456_v41  ;;  %v1459_v48 = vmul.f32 -1.442695, %v648_v46  ;;  %v1460_v49 = vmul.f32 -1.442695, %v537_v47  ;;  %v650_v50 = vpop.f32.mrb[2].mxu1  ;;  %v539_v51 = vpop.f32.mrb[3].mxu0 }
 0x131   : > { %1690 = vpow2.f32 %v1458_v44  ;;  %v1462_v52 = vmul.f32 -1.442695, %v650_v50  ;;  %v652_v53 = vpop.f32.mrb[3].mxu1  ;;  %v1461_v54 = vmul.f32 -1.442695, %v539_v51 }
 0x132   : > { %1692 = vpow2.f32 %v1457_v45  ;;  %v1463_v55 = vmul.f32 -1.442695, %v652_v53 }
 0x133   : > { %1694 = vpow2.f32 %v1459_v48 }
 0x134   : > { %1696 = vpow2.f32 %v1460_v49 }
 0x135   : > { %1698 = vpow2.f32 %v1462_v52  ;;  %v543_v56 = vpop.f32.mrb[4].mxu0 }
 0x136   : > { %1700 = vpow2.f32 %v1461_v54  ;;  %v1464_v57 = vmul.f32 -1.442695, %v543_v56  ;;  %v656_v58 = vpop.f32.mrb[4].mxu1  ;;  %v545_v59 = vpop.f32.mrb[5].mxu0 }
 0x137   : > { %1702 = vpow2.f32 %v1463_v55  ;;  %v1466_v60 = vmul.f32 -1.442695, %v656_v58  ;;  %v1465_v61 = vmul.f32 -1.442695, %v545_v59  ;;  %v658_v62 = vpop.f32.mrb[5].mxu1  ;;  %v547_v63 = vpop.f32.mrb[6].mxu0 }
 0x138   : > { %1704 = vpow2.f32 %v1464_v57  ;;  %v1467_v0 = vmul.f32 -1.442695, %v658_v62  ;;  %v1468_v1 = vmul.f32 -1.442695, %v547_v63  ;;  %v660_v2 = vpop.f32.mrb[6].mxu1  ;;  %v549_v3 = vpop.f32.mrb[7].mxu0 }
 0x139   : > { %1706 = vpow2.f32 %v1466_v60  ;;  %v662_v4 = vpop.f32.mrb[7].mxu1  ;;  %v1470_v39 = vmul.f32 -1.442695, %v660_v2  ;;  %v1469_v44 = vmul.f32 -1.442695, %v549_v3 }
 0x13a   : > { %v1689_v5 = vpop.eup %1688  ;;  %1708 = vpow2.f32 %v1465_v61  ;;  %v1471_v47 = vmul.f32 -1.442695, %v662_v4 }
 0x13b   : > { %v1691_v6 = vpop.eup %1690  ;;  %v917_v7 = vadd.f32 1.0, %v1689_v5  ;;  %1710 = vpow2.f32 %v1467_v0 }
 0x13c   : > { %v1693_v8 = vpop.eup %1692  ;;  %v919_v9 = vadd.f32 1.0, %v1691_v6  ;;  %1712 = vpow2.f32 %v1468_v1 }
 0x13d   : > { %v1695_v10 = vpop.eup %1694  ;;  %1714 = vrcp.f32 %v917_v7  ;;  %v918_v11 = vadd.f32 1.0, %v1693_v8  ;;  %v553_v12 = vpop.f32.mrb[8].mxu0 }
 0x13e   : > { %v1697_v13 = vpop.eup %1696  ;;  %1716 = vrcp.f32 %v919_v9  ;;  %v920_v14 = vadd.f32 1.0, %v1695_v10  ;;  %v666_v15 = vpop.f32.mrb[8].mxu1  ;;  %v1472_v51 = vmul.f32 -1.442695, %v553_v12 }
 0x13f   : > { %v555_v16 = vpop.f32.mrb[9].mxu0  ;;  %v1699_v17 = vpop.eup %1698  ;;  %1718 = vrcp.f32 %v918_v11  ;;  %v921_v18 = vadd.f32 1.0, %v1697_v13  ;;  %v1474_v55 = vmul.f32 -1.442695, %v666_v15 }
 0x140   : > { %v668_v19 = vpop.f32.mrb[9].mxu1  ;;  %v1701_v20 = vpop.eup %1700  ;;  %1720 = vrcp.f32 %v920_v14  ;;  %v923_v21 = vadd.f32 1.0, %v1699_v17  ;;  %v1473_v57 = vmul.f32 -1.442695, %v555_v16 }
 0x141   : > { %v557_v22 = vpop.f32.mrb[10].mxu0  ;;  %v2127_v23 = vpop.f32.mrb[10].mxu1  ;;  %1722 = vrcp.f32 %v921_v18  ;;  %v922_v25 = vadd.f32 1.0, %v1701_v20  ;;  %v1475_v59 = vmul.f32 -1.442695, %v668_v19 }
 0x142   : > { %v1703_v24 = vpop.eup %1702  ;;  %v2129_v26 = vpop.f32.mrb[11].mxu0  ;;  %1724 = vrcp.f32 %v923_v21  ;;  %v1476_v61 = vmul.f32 -1.442695, %v557_v22  ;;  %v1478_v0 = vmul.f32 -1.442695, %v2127_v23 }
 0x143   : > { %v1705_v27 = vpop.eup %1704  ;;  %v924_v28 = vadd.f32 1.0, %v1703_v24  ;;  %v2131_v29 = vpop.f32.mrb[11].mxu1  ;;  %1726 = vrcp.f32 %v922_v25  ;;  %v1477_v4 = vmul.f32 -1.442695, %v2129_v26 }
 0x144   : > { %v1707_v30 = vpop.eup %1706  ;;  %v925_v31 = vadd.f32 1.0, %v1705_v27  ;;  %v1479_v8 = vmul.f32 -1.442695, %v2131_v29 }
 0x145   : > { %v1709_v32 = vpop.eup %1708  ;;  %1728 = vrcp.f32 %v924_v28  ;;  %v927_v33 = vadd.f32 1.0, %v1707_v30  ;;  %v563_v36 = vpop.f32.mrb[12].mxu0 }
 0x146   : > { %v1711_v34 = vpop.eup %1710  ;;  %1730 = vrcp.f32 %v925_v31  ;;  %v926_v35 = vadd.f32 1.0, %v1709_v32  ;;  %v676_v40 = vpop.f32.mrb[12].mxu1  ;;  %v1480_v12 = vmul.f32 -1.442695, %v563_v36 }
 0x147   : > { %v1713_v37 = vpop.eup %1712  ;;  %1732 = vrcp.f32 %v927_v33  ;;  %v928_v38 = vadd.f32 1.0, %v1711_v34  ;;  %v2133_v41 = vpop.f32.mrb[13].mxu0  ;;  %v1482_v15 = vmul.f32 -1.442695, %v676_v40 }
 0x148   : > { %v1715_v42 = vpop.eup %1714  ;;  %1734 = vrcp.f32 %v926_v35  ;;  %v929_v43 = vadd.f32 1.0, %v1713_v37  ;;  %v2135_v45 = vpop.f32.mrb[13].mxu1 }
 0x149   : > { %v1717_v46 = vpop.eup %1716  ;;  %1109 = vst [vmem:[%s2137_s9] sm:$0xff] %v1715_v42  ;;  %1736 = vrcp.f32 %v928_v38  ;;  %v2140_v48 = vpop.f32.mrb[14].mxu0 }
 0x14a   : > { %v2142_v49 = vpop.f32.mrb[14].mxu1  ;;  %v1719_v50 = vpop.eup %1718  ;;  %1111 = vst [vmem:[%s2137_s9 + $0x10] sm:$0xff] %v1717_v46  ;;  %1738 = vrcp.f32 %v929_v43 }
 0x14b   : > { %v2145_v52 = vpop.f32.mrb[15].mxu0  ;;  %v2147_v53 = vpop.f32.mrb[15].mxu1  ;;  %1110 = vst [vmem:[%s2137_s9 + $0x8] sm:$0xff] %v1719_v50  ;;  %1740 = vpow2.f32 %v1470_v39 }
 0x14c   : > { %v1721_v54 = vpop.eup %1720  ;;  %1742 = vpow2.f32 %v1469_v44 }
 0x14d   : > { %v1723_v56 = vpop.eup %1722  ;;  %1112 = vst [vmem:[%s2137_s9 + $0x18] sm:$0xff] %v1721_v54  ;;  %1744 = vpow2.f32 %v1471_v47  ;;  %v2153_v62 = vpop.f32.mrb[16].mxu0 }
 0x14e   : > { %v1725_v58 = vpop.eup %1724  ;;  %1113 = vst [vmem:[%s2137_s9 + $0x20] sm:$0xff] %v1723_v56  ;;  %1746 = vpow2.f32 %v1472_v51  ;;  %v2157_v1 = vpop.f32.mrb[16].mxu1 }
 0x14f   : > { %v1727_v60 = vpop.eup %1726  ;;  %1115 = vst [vmem:[%s2137_s9 + $0x30] sm:$0xff] %v1725_v58  ;;  %1748 = vpow2.f32 %v1474_v55  ;;  %v2159_v2 = vpop.f32.mrb[17].mxu0 }
 0x150   : > { %v1729_v63 = vpop.eup %1728  ;;  %1114 = vst [vmem:[%s2137_s9 + $0x28] sm:$0xff] %v1727_v60  ;;  %1750 = vpow2.f32 %v1473_v57  ;;  %v2163_v5 = vpop.f32.mrb[17].mxu1  ;;  %v1481_v60 = vmul.f32 -1.442695, %v2133_v41 }
 0x151   : > { %v1731_v3 = vpop.eup %1730  ;;  %1116 = vst [vmem:[%s2137_s9 + $0x38] sm:$0xff] %v1729_v63  ;;  %v2165_v6 = vpop.f32.mrb[18].mxu0  ;;  %1752 = vpow2.f32 %v1475_v59 }
 0x152   : > { %v1733_v7 = vpop.eup %1732  ;;  %1117 = vst [vmem:[%s2137_s9 + $0x40] sm:$0xff] %v1731_v3  ;;  %v2169_v9 = vpop.f32.mrb[18].mxu1  ;;  %1754 = vpow2.f32 %v1476_v61 }
 0x153   : > { %v2171_v10 = vpop.f32.mrb[19].mxu0  ;;  %v1735_v11 = vpop.eup %1734  ;;  %1119 = vst [vmem:[%s2137_s9 + $0x50] sm:$0xff] %v1733_v7  ;;  %1756 = vpow2.f32 %v1478_v0 }
 0x154   : > { %v2174_v13 = vpop.f32.mrb[19].mxu1  ;;  %v1737_v14 = vpop.eup %1736  ;;  %1118 = vst [vmem:[%s2137_s9 + $0x48] sm:$0xff] %v1735_v11  ;;  %1758 = vpow2.f32 %v1477_v4  ;;  %v1483_v4 = vmul.f32 -1.442695, %v2135_v45  ;;  %v1484_v11 = vmul.f32 -1.442695, %v2140_v48 }
 0x155   : > { %v1739_v16 = vpop.eup %1738  ;;  %1120 = vst [vmem:[%s2137_s9 + $0x58] sm:$0xff] %v1737_v14  ;;  %1760 = vpow2.f32 %v1479_v8  ;;  %v2179_v20 = vpop.f32.mrb[20].mxu0  ;;  %v1486_v14 = vmul.f32 -1.442695, %v2142_v49  ;;  %v1485_v45 = vmul.f32 -1.442695, %v2145_v52 }
 0x156   : > { %v1741_v17 = vpop.eup %1740  ;;  %1121 = vst [vmem:[%s2137_s9 + $0x60] sm:$0xff] %v1739_v16  ;;  %1762 = vpow2.f32 %v1480_v12  ;;  %v2181_v23 = vpop.f32.mrb[20].mxu1  ;;  %v1487_v48 = vmul.f32 -1.442695, %v2147_v53  ;;  %v1490_v52 = vmul.f32 -1.442695, %v2157_v1 }
 0x157   : > { %v1743_v18 = vpop.eup %1742  ;;  %v931_v19 = vadd.f32 1.0, %v1741_v17  ;;  %1764 = vpow2.f32 %v1482_v15  ;;  %v2183_v24 = vpop.f32.mrb[21].mxu0  ;;  %v1491_v1 = vmul.f32 -1.442695, %v2163_v5 }
 0x158   : > { %v1745_v21 = vpop.eup %1744  ;;  %v930_v22 = vadd.f32 1.0, %v1743_v18  ;;  %v2185_v27 = vpop.f32.mrb[21].mxu1 }
 0x159   : > { %v1747_v25 = vpop.eup %1746  ;;  %1766 = vrcp.f32 %v931_v19  ;;  %v932_v26 = vadd.f32 1.0, %v1745_v21  ;;  %v2187_v30 = vpop.f32.mrb[22].mxu0  ;;  %v1488_v19 = vmul.f32 -1.442695, %v2153_v62  ;;  %v1489_v62 = vmul.f32 -1.442695, %v2159_v2 }
 0x15a   : > { %v1749_v28 = vpop.eup %1748  ;;  %1768 = vrcp.f32 %v930_v22  ;;  %v933_v29 = vadd.f32 1.0, %v1747_v25  ;;  %v2189_v31 = vpop.f32.mrb[22].mxu1 }
 0x15b   : > { %v1751_v32 = vpop.eup %1750  ;;  %1770 = vrcp.f32 %v932_v26  ;;  %v935_v33 = vadd.f32 1.0, %v1749_v28  ;;  %v2191_v34 = vpop.f32.mrb[23].mxu0 }
 0x15c   : > { %v1753_v35 = vpop.eup %1752  ;;  %1772 = vrcp.f32 %v933_v29  ;;  %v934_v36 = vadd.f32 1.0, %v1751_v32  ;;  %v2193_v37 = vpop.f32.mrb[23].mxu1 }
 0x15d   : > { %v1755_v38 = vpop.eup %1754  ;;  %1774 = vrcp.f32 %v935_v33  ;;  %v936_v39 = vadd.f32 1.0, %v1753_v35  ;;  %v2195_v46 = vpop.f32.mrb[24].mxu0 }
 0x15e   : > { %v1757_v40 = vpop.eup %1756  ;;  %1776 = vrcp.f32 %v934_v36  ;;  %v937_v42 = vadd.f32 1.0, %v1755_v38  ;;  %v2197_v51 = vpop.f32.mrb[24].mxu1  ;;  %v1492_v36 = vmul.f32 -1.442695, %v2165_v6  ;;  %v1494_v38 = vmul.f32 -1.442695, %v2169_v9 }
 0x15f   : > { %v1759_v43 = vpop.eup %1758  ;;  %1778 = vrcp.f32 %v936_v39  ;;  %v939_v44 = vadd.f32 1.0, %v1757_v40  ;;  %v2199_v54 = vpop.f32.mrb[25].mxu0  ;;  %v1493_v40 = vmul.f32 -1.442695, %v2171_v10 }
 0x160   : > { %v1761_v47 = vpop.eup %1760  ;;  %1780 = vrcp.f32 %v937_v42  ;;  %v938_v50 = vadd.f32 1.0, %v1759_v43  ;;  %v2201_v57 = vpop.f32.mrb[25].mxu1 }
 0x161   : > { %v1763_v55 = vpop.eup %1762  ;;  %1782 = vrcp.f32 %v939_v44  ;;  %v940_v56 = vadd.f32 1.0, %v1761_v47  ;;  %v2204_v61 = vpop.f32.mrb[26].mxu0 }
 0x162   : > { %v1765_v58 = vpop.eup %1764  ;;  %1784 = vrcp.f32 %v938_v50  ;;  %v941_v59 = vadd.f32 1.0, %v1763_v55  ;;  %v2206_v63 = vpop.f32.mrb[26].mxu1 }
 0x163   : > { %v1767_v0 = vpop.eup %1766  ;;  %1786 = vrcp.f32 %v940_v56  ;;  %v943_v3 = vadd.f32 1.0, %v1765_v58  ;;  %v2209_v7 = vpop.f32.mrb[27].mxu0 }
 0x164   : > { %v1769_v8 = vpop.eup %1768  ;;  %1123 = vst [vmem:[%s2137_s9 + $0x70] sm:$0xff] %v1767_v0  ;;  %1788 = vrcp.f32 %v941_v59  ;;  %v2213_v41 = vpop.f32.mrb[27].mxu1 }
 0x165   : > { %v1771_v12 = vpop.eup %1770  ;;  %1122 = vst [vmem:[%s2137_s9 + $0x68] sm:$0xff] %v1769_v8  ;;  %1790 = vrcp.f32 %v943_v3  ;;  %v2221_v17 = vpop.f32.mrb[28].mxu0 }
 0x166   : > { %v1773_v15 = vpop.eup %1772  ;;  %1124 = vst [vmem:[%s2137_s9 + $0x78] sm:$0xff] %v1771_v12  ;;  %1792 = vpow2.f32 %v1481_v60  ;;  %v2225_v49 = vpop.f32.mrb[28].mxu1 }
 0x167   : > { %v1775_v16 = vpop.eup %1774  ;;  %1125 = vst [vmem:[%s2137_s9 + $0x80] sm:$0xff] %v1773_v15  ;;  %1794 = vpow2.f32 %v1483_v4  ;;  %v2227_v21 = vpop.f32.mrb[29].mxu0 }
 0x168   : > { %v1777_v18 = vpop.eup %1776  ;;  %1127 = vst [vmem:[%s2137_s9 + $0x90] sm:$0xff] %v1775_v16  ;;  %1796 = vpow2.f32 %v1484_v11  ;;  %v2231_v25 = vpop.f32.mrb[29].mxu1 }
 0x169   : > { %v1779_v22 = vpop.eup %1778  ;;  %1126 = vst [vmem:[%s2137_s9 + $0x88] sm:$0xff] %v1777_v18  ;;  %1798 = vpow2.f32 %v1486_v14  ;;  %v2233_v53 = vpop.f32.mrb[30].mxu0 }
 0x16a   : > { %v1781_v26 = vpop.eup %1780  ;;  %1128 = vst [vmem:[%s2137_s9 + $0x98] sm:$0xff] %v1779_v22  ;;  %1800 = vpow2.f32 %v1485_v45  ;;  %v2237_v28 = vpop.f32.mrb[30].mxu1 }
 0x16b   : > { %v2239_v29 = vpop.f32.mrb[31].mxu0  ;;  %v1783_v32 = vpop.eup %1782  ;;  %1129 = vst [vmem:[%s2137_s9 + $0xa0] sm:$0xff] %v1781_v26  ;;  %1802 = vpow2.f32 %v1487_v48  ;;  %v1496_v26 = vmul.f32 -1.442695, %v2179_v20  ;;  %v1500_v20 = vmul.f32 -1.442695, %v2187_v30 }
 0x16c   : > { %v2243_v33 = vpop.f32.mrb[31].mxu1  ;;  %v1785_v35 = vpop.eup %1784  ;;  %1131 = vst [vmem:[%s2137_s9 + $0xb0] sm:$0xff] %v1783_v32  ;;  %1804 = vpow2.f32 %v1488_v19  ;;  %v1495_v19 = vmul.f32 -1.442695, %v2174_v13  ;;  %v1498_v32 = vmul.f32 -1.442695, %v2181_v23 }
 0x16d   : > { %v1787_v2 = vpop.eup %1786  ;;  %1130 = vst [vmem:[%s2137_s9 + $0xa8] sm:$0xff] %v1785_v35  ;;  %1806 = vpow2.f32 %v1490_v52  ;;  %v1497_v35 = vmul.f32 -1.442695, %v2183_v24  ;;  %v1499_v13 = vmul.f32 -1.442695, %v2185_v27 }
 0x16e   : > { %v1789_v39 = vpop.eup %1788  ;;  %1132 = vst [vmem:[%s2137_s9 + $0xb8] sm:$0xff] %v1787_v2  ;;  %1808 = vpow2.f32 %v1489_v62  ;;  %v1502_v23 = vmul.f32 -1.442695, %v2189_v31  ;;  %v1501_v24 = vmul.f32 -1.442695, %v2191_v34 }
 0x16f   : > { %v1791_v42 = vpop.eup %1790  ;;  %1133 = vst [vmem:[%s2137_s9 + $0xc0] sm:$0xff] %v1789_v39  ;;  %1810 = vpow2.f32 %v1491_v1  ;;  %v1503_v27 = vmul.f32 -1.442695, %v2193_v37  ;;  %v1504_v30 = vmul.f32 -1.442695, %v2195_v46 }
 0x170   : > { %v1793_v5 = vpop.eup %1792  ;;  %1135 = vst [vmem:[%s2137_s9 + $0xd0] sm:$0xff] %v1791_v42  ;;  %1812 = vpow2.f32 %v1492_v36  ;;  %v1506_v31 = vmul.f32 -1.442695, %v2197_v51  ;;  %v1505_v34 = vmul.f32 -1.442695, %v2199_v54 }
 0x171   : > { %v1795_v43 = vpop.eup %1794  ;;  %v942_v44 = vadd.f32 1.0, %v1793_v5  ;;  %1814 = vpow2.f32 %v1494_v38  ;;  %v1507_v37 = vmul.f32 -1.442695, %v2201_v57 }
 0x172   : > { %v1797_v6 = vpop.eup %1796  ;;  %v944_v47 = vadd.f32 1.0, %v1795_v43  ;;  %1816 = vpow2.f32 %v1493_v40 }
 0x173   : > { %v1799_v50 = vpop.eup %1798  ;;  %1818 = vrcp.f32 %v942_v44  ;;  %v945_v9 = vadd.f32 1.0, %v1797_v6 }
 0x174   : > { %v1801_v55 = vpop.eup %1800  ;;  %1820 = vrcp.f32 %v944_v47  ;;  %v947_v56 = vadd.f32 1.0, %v1799_v50 }
 0x175   : > { %v1803_v58 = vpop.eup %1802  ;;  %1822 = vrcp.f32 %v945_v9  ;;  %v946_v10 = vadd.f32 1.0, %v1801_v55 }
 0x176   : > { %v1805_v59 = vpop.eup %1804  ;;  %1824 = vrcp.f32 %v947_v56  ;;  %v948_v60 = vadd.f32 1.0, %v1803_v58 }
 0x177   : > { %v1807_v0 = vpop.eup %1806  ;;  %1826 = vrcp.f32 %v946_v10  ;;  %v949_v3 = vadd.f32 1.0, %v1805_v59 }
 0x178   : > { %v1809_v4 = vpop.eup %1808  ;;  %1828 = vrcp.f32 %v948_v60  ;;  %v951_v8 = vadd.f32 1.0, %v1807_v0 }
 0x179   : > { %v1811_v11 = vpop.eup %1810  ;;  %1830 = vrcp.f32 %v949_v3  ;;  %v950_v12 = vadd.f32 1.0, %v1809_v4 }
 0x17a   : > { %v1813_v14 = vpop.eup %1812  ;;  %1832 = vrcp.f32 %v951_v8  ;;  %v952_v15 = vadd.f32 1.0, %v1811_v11 }
 0x17b   : > { %v1815_v45 = vpop.eup %1814  ;;  %1834 = vrcp.f32 %v950_v12  ;;  %v953_v16 = vadd.f32 1.0, %v1813_v14 }
 0x17c   : > { %v1817_v48 = vpop.eup %1816  ;;  %1836 = vrcp.f32 %v952_v15  ;;  %v955_v18 = vadd.f32 1.0, %v1815_v45 }
 0x17d   : > { %v1819_v22 = vpop.eup %1818  ;;  %1838 = vrcp.f32 %v953_v16  ;;  %v954_v52 = vadd.f32 1.0, %v1817_v48 }
 0x17e   : > { %v1821_v62 = vpop.eup %1820  ;;  %1134 = vst [vmem:[%s2137_s9 + $0xc8] sm:$0xff] %v1819_v22  ;;  %1840 = vrcp.f32 %v955_v18 }
 0x17f   : > { %v1823_v1 = vpop.eup %1822  ;;  %1136 = vst [vmem:[%s2137_s9 + $0xd8] sm:$0xff] %v1821_v62  ;;  %1842 = vrcp.f32 %v954_v52 }
 0x180   : > { %v1825_v36 = vpop.eup %1824  ;;  %1137 = vst [vmem:[%s2137_s9 + $0xe0] sm:$0xff] %v1823_v1  ;;  %1844 = vpow2.f32 %v1495_v19  ;;  %v1508_v19 = vmul.f32 -1.442695, %v2204_v61  ;;  %v1512_v61 = vmul.f32 -1.442695, %v2221_v17 }
 0x181   : > { %v1827_v2 = vpop.eup %1826  ;;  %1139 = vst [vmem:[%s2137_s9 + $0xf0] sm:$0xff] %v1825_v36  ;;  %1846 = vpow2.f32 %v1496_v26  ;;  %v1510_v26 = vmul.f32 -1.442695, %v2206_v63  ;;  %v1514_v63 = vmul.f32 -1.442695, %v2225_v49 }
 0x182   : > { %v1829_v38 = vpop.eup %1828  ;;  %1138 = vst [vmem:[%s2137_s9 + $0xe8] sm:$0xff] %v1827_v2  ;;  %1848 = vpow2.f32 %v1498_v32  ;;  %v1509_v32 = vmul.f32 -1.442695, %v2209_v7  ;;  %v1513_v7 = vmul.f32 -1.442695, %v2227_v21 }
 0x183   : > { %v1831_v39 = vpop.eup %1830  ;;  %1140 = vst [vmem:[%s2137_s9 + $0xf8] sm:$0xff] %v1829_v38  ;;  %1850 = vpow2.f32 %v1497_v35  ;;  %v1511_v35 = vmul.f32 -1.442695, %v2213_v41  ;;  %v1515_v41 = vmul.f32 -1.442695, %v2231_v25 }
 0x184   : > { %v1833_v40 = vpop.eup %1832  ;;  %1141 = vst [vmem:[%s2137_s9 + $0x100] sm:$0xff] %v1831_v39  ;;  %1852 = vpow2.f32 %v1499_v13  ;;  %v1516_v17 = vmul.f32 -1.442695, %v2233_v53  ;;  %v1518_v49 = vmul.f32 -1.442695, %v2237_v28 }
 0x185   : > { %v1835_v42 = vpop.eup %1834  ;;  %1143 = vst [vmem:[%s2137_s9 + $0x110] sm:$0xff] %v1833_v40  ;;  %1854 = vpow2.f32 %v1500_v20  ;;  %v1517_v39 = vmul.f32 -1.442695, %v2239_v29  ;;  %v1519_v25 = vmul.f32 -1.442695, %v2243_v33 }
 0x186   : > { %v1837_v5 = vpop.eup %1836  ;;  %1142 = vst [vmem:[%s2137_s9 + $0x108] sm:$0xff] %v1835_v42  ;;  %1856 = vpow2.f32 %v1502_v23 }
 0x187   : > { %v1839_v43 = vpop.eup %1838  ;;  %1144 = vst [vmem:[%s2137_s9 + $0x118] sm:$0xff] %v1837_v5  ;;  %1858 = vpow2.f32 %v1501_v24 }
 0x188   : > { %v1841_v44 = vpop.eup %1840  ;;  %1145 = vst [vmem:[%s2137_s9 + $0x120] sm:$0xff] %v1839_v43  ;;  %1860 = vpow2.f32 %v1503_v27 }
 0x189   : > { %v1843_v6 = vpop.eup %1842  ;;  %1147 = vst [vmem:[%s2137_s9 + $0x130] sm:$0xff] %v1841_v44  ;;  %1862 = vpow2.f32 %v1504_v30 }
 0x18a   : > { %v1845_v46 = vpop.eup %1844  ;;  %1146 = vst [vmem:[%s2137_s9 + $0x128] sm:$0xff] %v1843_v6  ;;  %1864 = vpow2.f32 %v1506_v31 }
 0x18b   : > { %v1847_v47 = vpop.eup %1846  ;;  %v956_v50 = vadd.f32 1.0, %v1845_v46  ;;  %1866 = vpow2.f32 %v1505_v34 }
 0x18c   : > { %v1849_v51 = vpop.eup %1848  ;;  %v957_v9 = vadd.f32 1.0, %v1847_v47  ;;  %1868 = vpow2.f32 %v1507_v37 }
 0x18d   : > { %v1851_v55 = vpop.eup %1850  ;;  %1870 = vrcp.f32 %v956_v50  ;;  %v959_v54 = vadd.f32 1.0, %v1849_v51 }
 0x18e   : > { %v1853_v56 = vpop.eup %1852  ;;  %1872 = vrcp.f32 %v957_v9  ;;  %v958_v58 = vadd.f32 1.0, %v1851_v55 }
 0x18f   : > { %v1855_v10 = vpop.eup %1854  ;;  %1874 = vrcp.f32 %v959_v54  ;;  %v960_v57 = vadd.f32 1.0, %v1853_v56 }
 0x190   : > { %v1857_v59 = vpop.eup %1856  ;;  %1876 = vrcp.f32 %v958_v58  ;;  %v961_v60 = vadd.f32 1.0, %v1855_v10 }
 0x191   : > { %v1859_v0 = vpop.eup %1858  ;;  %1878 = vrcp.f32 %v960_v57  ;;  %v963_v3 = vadd.f32 1.0, %v1857_v59 }
 0x192   : > { %v1861_v4 = vpop.eup %1860  ;;  %1880 = vrcp.f32 %v961_v60  ;;  %v962_v8 = vadd.f32 1.0, %v1859_v0 }
 0x193   : > { %v1863_v11 = vpop.eup %1862  ;;  %1882 = vrcp.f32 %v963_v3  ;;  %v964_v12 = vadd.f32 1.0, %v1861_v4 }
 0x194   : > { %v1865_v14 = vpop.eup %1864  ;;  %1884 = vrcp.f32 %v962_v8  ;;  %v965_v15 = vadd.f32 1.0, %v1863_v11 }
 0x195   : > { %v1867_v45 = vpop.eup %1866  ;;  %1886 = vrcp.f32 %v964_v12  ;;  %v967_v16 = vadd.f32 1.0, %v1865_v14 }
 0x196   : > { %v1869_v48 = vpop.eup %1868  ;;  %1888 = vrcp.f32 %v965_v15  ;;  %v966_v18 = vadd.f32 1.0, %v1867_v45 }
 0x197   : > { %v1871_v22 = vpop.eup %1870  ;;  %1890 = vrcp.f32 %v967_v16  ;;  %v968_v52 = vadd.f32 1.0, %v1869_v48  ;;  %v1198_v48 = vld [vmem:[%s2137_s9] sm:$0xff] (%p2061_p5) }
 0x198   : > { %v1873_v62 = vpop.eup %1872  ;;  %1148 = vst [vmem:[%s2137_s9 + $0x138] sm:$0xff] %v1871_v22  ;;  %1892 = vrcp.f32 %v966_v18  ;;  %v1200_v18 = vld [vmem:[%s2137_s9 + $0x8] sm:$0xff] (%p2061_p5)  ;;  %v1204_v22 = vld [vmem:[%s2137_s9 + $0x18] sm:$0xff] (%p2061_p5)  ;;  %1199 = vst [vmem:[%s2332_s25] sm:$0xff] (%p2061_p5), %v1198_v48 }
 0x199   : > { %v1875_v1 = vpop.eup %1874  ;;  %1149 = vst [vmem:[%s2137_s9 + $0x140] sm:$0xff] %v1873_v62  ;;  %1894 = vrcp.f32 %v968_v52  ;;  %v1206_v52 = vld [vmem:[%s2137_s9 + $0x20] sm:$0xff] (%p2061_p5)  ;;  %v1210_v62 = vld [vmem:[%s2137_s9 + $0x30] sm:$0xff] (%p2061_p5)  ;;  %1201 = vst [vmem:[%s2332_s25 + $0x8] sm:$0xff] (%p2061_p5), %v1200_v18 }
 0x19a   : > { %v1877_v36 = vpop.eup %1876  ;;  %1151 = vst [vmem:[%s2137_s9 + $0x150] sm:$0xff] %v1875_v1  ;;  %1896 = vpow2.f32 %v1508_v19  ;;  %v1202_v19 = vld [vmem:[%s2137_s9 + $0x10] sm:$0xff] (%p2061_p5)  ;;  %v1214_v1 = vld [vmem:[%s2137_s9 + $0x40] sm:$0xff] (%p2061_p5)  ;;  %1205 = vst [vmem:[%s2332_s25 + $0x18] sm:$0xff] (%p2061_p5), %v1204_v22 }
 0x19b   : > { %v1879_v13 = vpop.eup %1878  ;;  %1150 = vst [vmem:[%s2137_s9 + $0x148] sm:$0xff] %v1877_v36  ;;  %1898 = vpow2.f32 %v1510_v26  ;;  %v1208_v26 = vld [vmem:[%s2137_s9 + $0x28] sm:$0xff] (%p2061_p5)  ;;  %v1218_v36 = vld [vmem:[%s2137_s9 + $0x50] sm:$0xff] (%p2061_p5)  ;;  %1203 = vst [vmem:[%s2332_s25 + $0x10] sm:$0xff] (%p2061_p5), %v1202_v19 }
 0x19c   : > { %v1881_v2 = vpop.eup %1880  ;;  %1152 = vst [vmem:[%s2137_s9 + $0x158] sm:$0xff] %v1879_v13  ;;  %1900 = vpow2.f32 %v1509_v32  ;;  %v1212_v32 = vld [vmem:[%s2137_s9 + $0x38] sm:$0xff] (%p2061_p5)  ;;  %1207 = vst [vmem:[%s2332_s25 + $0x40] sm:$0xff] (%p2061_p5), %v1206_v52  ;;  %v1222_v13 = vld [vmem:[%s2137_s9 + $0x60] sm:$0xff] (%p2061_p5) }
 0x19d   : > { %v1883_v20 = vpop.eup %1882  ;;  %1153 = vst [vmem:[%s2137_s9 + $0x160] sm:$0xff] %v1881_v2  ;;  %1902 = vpow2.f32 %v1511_v35  ;;  %v1216_v35 = vld [vmem:[%s2137_s9 + $0x48] sm:$0xff] (%p2061_p5)  ;;  %1209 = vst [vmem:[%s2332_s25 + $0x48] sm:$0xff] (%p2061_p5), %v1208_v26  ;;  %v1226_v2 = vld [vmem:[%s2137_s9 + $0x70] sm:$0xff] (%p2061_p5) }
 0x19e   : > { %v1885_v38 = vpop.eup %1884  ;;  %1155 = vst [vmem:[%s2137_s9 + $0x170] sm:$0xff] %v1883_v20  ;;  %1904 = vpow2.f32 %v1512_v61  ;;  %v1220_v61 = vld [vmem:[%s2137_s9 + $0x58] sm:$0xff] (%p2061_p5)  ;;  %1211 = vst [vmem:[%s2332_s25 + $0x50] sm:$0xff] (%p2061_p5), %v1210_v62  ;;  %v1230_v20 = vld [vmem:[%s2137_s9 + $0x80] sm:$0xff] (%p2061_p5) }
 0x19f   : > { %v1887_v23 = vpop.eup %1886  ;;  %1154 = vst [vmem:[%s2137_s9 + $0x168] sm:$0xff] %v1885_v38  ;;  %1906 = vpow2.f32 %v1514_v63  ;;  %1213 = vst [vmem:[%s2332_s25 + $0x58] sm:$0xff] (%p2061_p5), %v1212_v32  ;;  %v1224_v63 = vld [vmem:[%s2137_s9 + $0x68] sm:$0xff] (%p2061_p5)  ;;  %v1234_v38 = vld [vmem:[%s2137_s9 + $0x90] sm:$0xff] (%p2061_p5) }
 0x1a0   : > { %v1889_v21 = vpop.eup %1888  ;;  %1156 = vst [vmem:[%s2137_s9 + $0x178] sm:$0xff] %v1887_v23  ;;  %1908 = vpow2.f32 %v1513_v7  ;;  %1215 = vst [vmem:[%s2332_s25 + $0x80] sm:$0xff] (%p2061_p5), %v1214_v1  ;;  %v1228_v7 = vld [vmem:[%s2137_s9 + $0x78] sm:$0xff] (%p2061_p5)  ;;  %v1238_v23 = vld [vmem:[%s2137_s9 + $0xa0] sm:$0xff] (%p2061_p5) }
 0x1a1   : > { %v1891_v24 = vpop.eup %1890  ;;  %1157 = vst [vmem:[%s2137_s9 + $0x180] sm:$0xff] %v1889_v21  ;;  %1910 = vpow2.f32 %v1515_v41  ;;  %1217 = vst [vmem:[%s2332_s25 + $0x88] sm:$0xff] (%p2061_p5), %v1216_v35  ;;  %v1232_v41 = vld [vmem:[%s2137_s9 + $0x88] sm:$0xff] (%p2061_p5)  ;;  %v1242_v21 = vld [vmem:[%s2137_s9 + $0xb0] sm:$0xff] (%p2061_p5) }
 0x1a2   : > { %v1893_v40 = vpop.eup %1892  ;;  %1159 = vst [vmem:[%s2137_s9 + $0x190] sm:$0xff] %v1891_v24  ;;  %1912 = vpow2.f32 %v1516_v17  ;;  %1219 = vst [vmem:[%s2332_s25 + $0x90] sm:$0xff] (%p2061_p5), %v1218_v36  ;;  %v1236_v17 = vld [vmem:[%s2137_s9 + $0x98] sm:$0xff] (%p2061_p5)  ;;  %v1246_v24 = vld [vmem:[%s2137_s9 + $0xc0] sm:$0xff] (%p2061_p5) }
 0x1a3   : > { %v1895_v53 = vpop.eup %1894  ;;  %1158 = vst [vmem:[%s2137_s9 + $0x188] sm:$0xff] %v1893_v40  ;;  %1914 = vpow2.f32 %v1518_v49  ;;  %1221 = vst [vmem:[%s2332_s25 + $0x98] sm:$0xff] (%p2061_p5), %v1220_v61  ;;  %v1240_v49 = vld [vmem:[%s2137_s9 + $0xa8] sm:$0xff] (%p2061_p5)  ;;  %v1250_v40 = vld [vmem:[%s2137_s9 + $0xd0] sm:$0xff] (%p2061_p5) }
 0x1a4   : > { %v1897_v27 = vpop.eup %1896  ;;  %1160 = vst [vmem:[%s2137_s9 + $0x198] sm:$0xff] %v1895_v53  ;;  %1916 = vpow2.f32 %v1517_v39  ;;  %1223 = vst [vmem:[%s2332_s25 + $0xc0] sm:$0xff] (%p2061_p5), %v1222_v13  ;;  %v1244_v39 = vld [vmem:[%s2137_s9 + $0xb8] sm:$0xff] (%p2061_p5) }
 0x1a5   : > { %v1899_v28 = vpop.eup %1898  ;;  %v969_v42 = vadd.f32 1.0, %v1897_v27  ;;  %1918 = vpow2.f32 %v1519_v25  ;;  %1225 = vst [vmem:[%s2332_s25 + $0xc8] sm:$0xff] (%p2061_p5), %v1224_v63  ;;  %1227 = vst [vmem:[%s2332_s25 + $0xd0] sm:$0xff] (%p2061_p5), %v1226_v2  ;;  %v1248_v25 = vld [vmem:[%s2137_s9 + $0xc8] sm:$0xff] (%p2061_p5)  ;;  %v1252_v53 = vld [vmem:[%s2137_s9 + $0xd8] sm:$0xff] (%p2061_p5) }
 0x1a6   : > { %v1901_v30 = vpop.eup %1900  ;;  %v971_v5 = vadd.f32 1.0, %v1899_v28  ;;  %1229 = vst [vmem:[%s2332_s25 + $0xd8] sm:$0xff] (%p2061_p5), %v1228_v7  ;;  %1231 = vst [vmem:[%s2332_s25 + $0x100] sm:$0xff] (%p2061_p5), %v1230_v20  ;;  %v1254_v27 = vld [vmem:[%s2137_s9 + $0xe0] sm:$0xff] (%p2061_p5)  ;;  %v1256_v28 = vld [vmem:[%s2137_s9 + $0xe8] sm:$0xff] (%p2061_p5) }
 0x1a7   : > { %v1903_v29 = vpop.eup %1902  ;;  %1920 = vrcp.f32 %v969_v42  ;;  %v970_v31 = vadd.f32 1.0, %v1901_v30  ;;  %1233 = vst [vmem:[%s2332_s25 + $0x108] sm:$0xff] (%p2061_p5), %v1232_v41  ;;  %1235 = vst [vmem:[%s2332_s25 + $0x110] sm:$0xff] (%p2061_p5), %v1234_v38  ;;  %v1258_v42 = vld [vmem:[%s2137_s9 + $0xf0] sm:$0xff] (%p2061_p5)  ;;  %v1260_v30 = vld [vmem:[%s2137_s9 + $0xf8] sm:$0xff] (%p2061_p5) }
 0x1a8   : > { %v1905_v43 = vpop.eup %1904  ;;  %1922 = vrcp.f32 %v971_v5  ;;  %v972_v33 = vadd.f32 1.0, %v1903_v29  ;;  %1237 = vst [vmem:[%s2332_s25 + $0x118] sm:$0xff] (%p2061_p5), %v1236_v17  ;;  %1239 = vst [vmem:[%s2332_s25 + $0x140] sm:$0xff] (%p2061_p5), %v1238_v23  ;;  %v1262_v5 = vld [vmem:[%s2137_s9 + $0x100] sm:$0xff] (%p2061_p5)  ;;  %v1264_v29 = vld [vmem:[%s2137_s9 + $0x108] sm:$0xff] (%p2061_p5) }
 0x1a9   : > { %v1907_v34 = vpop.eup %1906  ;;  %1924 = vrcp.f32 %v970_v31  ;;  %v973_v44 = vadd.f32 1.0, %v1905_v43  ;;  %1241 = vst [vmem:[%s2332_s25 + $0x148] sm:$0xff] (%p2061_p5), %v1240_v49  ;;  %1243 = vst [vmem:[%s2332_s25 + $0x150] sm:$0xff] (%p2061_p5), %v1242_v21  ;;  %v1266_v31 = vld [vmem:[%s2137_s9 + $0x110] sm:$0xff] (%p2061_p5)  ;;  %v1268_v43 = vld [vmem:[%s2137_s9 + $0x118] sm:$0xff] (%p2061_p5) }
 0x1aa   : > { %v1909_v37 = vpop.eup %1908  ;;  %1926 = vrcp.f32 %v972_v33  ;;  %v975_v6 = vadd.f32 1.0, %v1907_v34  ;;  %1245 = vst [vmem:[%s2332_s25 + $0x158] sm:$0xff] (%p2061_p5), %v1244_v39  ;;  %1247 = vst [vmem:[%s2332_s25 + $0x180] sm:$0xff] (%p2061_p5), %v1246_v24  ;;  %v1270_v33 = vld [vmem:[%s2137_s9 + $0x120] sm:$0xff] (%p2061_p5)  ;;  %v1272_v34 = vld [vmem:[%s2137_s9 + $0x128] sm:$0xff] (%p2061_p5) }
 0x1ab   : > { %v1911_v46 = vpop.eup %1910  ;;  %1928 = vrcp.f32 %v973_v44  ;;  %v974_v47 = vadd.f32 1.0, %v1909_v37  ;;  %1249 = vst [vmem:[%s2332_s25 + $0x188] sm:$0xff] (%p2061_p5), %v1248_v25  ;;  %1251 = vst [vmem:[%s2332_s25 + $0x190] sm:$0xff] (%p2061_p5), %v1250_v40  ;;  %v1274_v44 = vld [vmem:[%s2137_s9 + $0x130] sm:$0xff] (%p2061_p5)  ;;  %v1276_v37 = vld [vmem:[%s2137_s9 + $0x138] sm:$0xff] (%p2061_p5) }
 0x1ac   : > { %v1913_v50 = vpop.eup %1912  ;;  %1930 = vrcp.f32 %v975_v6  ;;  %v976_v51 = vadd.f32 1.0, %v1911_v46  ;;  %1253 = vst [vmem:[%s2332_s25 + $0x198] sm:$0xff] (%p2061_p5), %v1252_v53  ;;  %1255 = vst [vmem:[%s2332_s25 + $0x1c0] sm:$0xff] (%p2061_p5), %v1254_v27  ;;  %v1278_v6 = vld [vmem:[%s2137_s9 + $0x140] sm:$0xff] (%p2061_p5)  ;;  %v1280_v46 = vld [vmem:[%s2137_s9 + $0x148] sm:$0xff] (%p2061_p5) }
 0x1ad   : > { %v1915_v9 = vpop.eup %1914  ;;  %1932 = vrcp.f32 %v974_v47  ;;  %v977_v55 = vadd.f32 1.0, %v1913_v50  ;;  %1257 = vst [vmem:[%s2332_s25 + $0x1c8] sm:$0xff] (%p2061_p5), %v1256_v28  ;;  %1259 = vst [vmem:[%s2332_s25 + $0x1d0] sm:$0xff] (%p2061_p5), %v1258_v42  ;;  %v1282_v47 = vld [vmem:[%s2137_s9 + $0x150] sm:$0xff] (%p2061_p5)  ;;  %v1284_v50 = vld [vmem:[%s2137_s9 + $0x158] sm:$0xff] (%p2061_p5) }
 0x1ae   : > { %v1917_v54 = vpop.eup %1916  ;;  %1934 = vrcp.f32 %v976_v51  ;;  %v979_v56 = vadd.f32 1.0, %v1915_v9  ;;  %1261 = vst [vmem:[%s2332_s25 + $0x1d8] sm:$0xff] (%p2061_p5), %v1260_v30  ;;  %1263 = vst [vmem:[%s2332_s25 + $0x200] sm:$0xff] (%p2061_p5), %v1262_v5  ;;  %v1286_v51 = vld [vmem:[%s2137_s9 + $0x160] sm:$0xff] (%p2061_p5)  ;;  %v1288_v9 = vld [vmem:[%s2137_s9 + $0x168] sm:$0xff] (%p2061_p5) }
 0x1af   : > { %v1919_v58 = vpop.eup %1918  ;;  %1936 = vrcp.f32 %v977_v55  ;;  %v978_v10 = vadd.f32 1.0, %v1917_v54  ;;  %1265 = vst [vmem:[%s2332_s25 + $0x208] sm:$0xff] (%p2061_p5), %v1264_v29  ;;  %1267 = vst [vmem:[%s2332_s25 + $0x210] sm:$0xff] (%p2061_p5), %v1266_v31  ;;  %v1290_v55 = vld [vmem:[%s2137_s9 + $0x170] sm:$0xff] (%p2061_p5)  ;;  %v1292_v54 = vld [vmem:[%s2137_s9 + $0x178] sm:$0xff] (%p2061_p5) }
 0x1b0   : > { %1938 = vrcp.f32 %v979_v56  ;;  %v980_v57 = vadd.f32 1.0, %v1919_v58  ;;  %1269 = vst [vmem:[%s2332_s25 + $0x218] sm:$0xff] (%p2061_p5), %v1268_v43  ;;  %1271 = vst [vmem:[%s2332_s25 + $0x240] sm:$0xff] (%p2061_p5), %v1270_v33  ;;  %v1294_v56 = vld [vmem:[%s2137_s9 + $0x180] sm:$0xff] (%p2061_p5)  ;;  %v1296_v58 = vld [vmem:[%s2137_s9 + $0x188] sm:$0xff] (%p2061_p5) }
 0x1b1   : > { %v1921_v59 = vpop.eup %1920  ;;  %1940 = vrcp.f32 %v978_v10  ;;  %1273 = vst [vmem:[%s2332_s25 + $0x248] sm:$0xff] (%p2061_p5), %v1272_v34  ;;  %1275 = vst [vmem:[%s2332_s25 + $0x250] sm:$0xff] (%p2061_p5), %v1274_v44  ;;  %v1298_v10 = vld [vmem:[%s2137_s9 + $0x190] sm:$0xff] (%p2061_p5) }
 0x1b2   : > { %v1923_v60 = vpop.eup %1922  ;;  %1161 = vst [vmem:[%s2137_s9 + $0x1a0] sm:$0xff] %v1921_v59  ;;  %1942 = vrcp.f32 %v980_v57  ;;  %1277 = vst [vmem:[%s2332_s25 + $0x258] sm:$0xff] (%p2061_p5), %v1276_v37  ;;  %v1300_v57 = vld [vmem:[%s2137_s9 + $0x198] sm:$0xff] (%p2061_p5) }
 0x1b3   : > { %v1925_v0 = vpop.eup %1924  ;;  %1163 = vst [vmem:[%s2137_s9 + $0x1b0] sm:$0xff] %v1923_v60  ;;  %1279 = vst [vmem:[%s2332_s25 + $0x280] sm:$0xff] (%p2061_p5), %v1278_v6 }
 0x1b4   : > { %v1927_v3 = vpop.eup %1926  ;;  %1162 = vst [vmem:[%s2137_s9 + $0x1a8] sm:$0xff] %v1925_v0  ;;  %1281 = vst [vmem:[%s2332_s25 + $0x288] sm:$0xff] (%p2061_p5), %v1280_v46 }
 0x1b5   : > { %v1929_v4 = vpop.eup %1928  ;;  %1164 = vst [vmem:[%s2137_s9 + $0x1b8] sm:$0xff] %v1927_v3  ;;  %1283 = vst [vmem:[%s2332_s25 + $0x290] sm:$0xff] (%p2061_p5), %v1282_v47 }
 0x1b6   : > { %v1931_v8 = vpop.eup %1930  ;;  %1165 = vst [vmem:[%s2137_s9 + $0x1c0] sm:$0xff] %v1929_v4  ;;  %1285 = vst [vmem:[%s2332_s25 + $0x298] sm:$0xff] (%p2061_p5), %v1284_v50 }
 0x1b7   : > { %v1933_v11 = vpop.eup %1932  ;;  %1167 = vst [vmem:[%s2137_s9 + $0x1d0] sm:$0xff] %v1931_v8  ;;  %1179 = sbr.rel (!%p2061_p5) target bundleno = 454 (0x1c6), region = 32  ;;  %1287 = vst [vmem:[%s2332_s25 + $0x2c0] sm:$0xff] (%p2061_p5), %v1286_v51 }
 0x1b8   : > { %v1935_v12 = vpop.eup %1934  ;;  %1166 = vst [vmem:[%s2137_s9 + $0x1c8] sm:$0xff] %v1933_v11  ;;  %1289 = vst [vmem:[%s2332_s25 + $0x2c8] sm:$0xff] (%p2061_p5), %v1288_v9 }
 0x1b9   : > { %v1937_v14 = vpop.eup %1936  ;;  %1168 = vst [vmem:[%s2137_s9 + $0x1d8] sm:$0xff] %v1935_v12  ;;  %1291 = vst [vmem:[%s2332_s25 + $0x2d0] sm:$0xff] (%p2061_p5), %v1290_v55  ;;  %v1302_v59 = vld [vmem:[%s2137_s9 + $0x1a0] sm:$0xff] (%p2061_p5) }
 0x1ba   : > { %v1939_v15 = vpop.eup %1938  ;;  %1169 = vst [vmem:[%s2137_s9 + $0x1e0] sm:$0xff] %v1937_v14  ;;  %1293 = vst [vmem:[%s2332_s25 + $0x2d8] sm:$0xff] (%p2061_p5), %v1292_v54  ;;  %v1306_v0 = vld [vmem:[%s2137_s9 + $0x1b0] sm:$0xff] (%p2061_p5) }
 0x1bb   : > { %v1941_v45 = vpop.eup %1940  ;;  %1171 = vst [vmem:[%s2137_s9 + $0x1f0] sm:$0xff] %v1939_v15  ;;  %1295 = vst [vmem:[%s2332_s25 + $0x300] sm:$0xff] (%p2061_p5), %v1294_v56  ;;  %v1304_v60 = vld [vmem:[%s2137_s9 + $0x1a8] sm:$0xff] (%p2061_p5) }
 0x1bc   : > { %v1943_v16 = vpop.eup %1942  ;;  %1170 = vst [vmem:[%s2137_s9 + $0x1e8] sm:$0xff] %v1941_v45  ;;  %1297 = vst [vmem:[%s2332_s25 + $0x308] sm:$0xff] (%p2061_p5), %v1296_v58  ;;  %v1308_v3 = vld [vmem:[%s2137_s9 + $0x1b8] sm:$0xff] (%p2061_p5) }
 0x1bd   : > { %1172 = vst [vmem:[%s2137_s9 + $0x1f8] sm:$0xff] %v1943_v16  ;;  %1299 = vst [vmem:[%s2332_s25 + $0x310] sm:$0xff] (%p2061_p5), %v1298_v10  ;;  %v1310_v4 = vld [vmem:[%s2137_s9 + $0x1c0] sm:$0xff] (%p2061_p5) }
 0x1be   : > { %1301 = vst [vmem:[%s2332_s25 + $0x318] sm:$0xff] %v1300_v57  ;;  %1303 = vst [vmem:[%s2332_s25 + $0x340] sm:$0xff] %v1302_v59  ;;  %v1314_v11 = vld [vmem:[%s2137_s9 + $0x1d0] sm:$0xff] }
 0x1bf   : > { %1305 = vst [vmem:[%s2332_s25 + $0x348] sm:$0xff] %v1304_v60  ;;  %1307 = vst [vmem:[%s2332_s25 + $0x350] sm:$0xff] %v1306_v0  ;;  %v1312_v8 = vld [vmem:[%s2137_s9 + $0x1c8] sm:$0xff] }
 0x1c0   : > { %1309 = vst [vmem:[%s2332_s25 + $0x358] sm:$0xff] %v1308_v3  ;;  %1311 = vst [vmem:[%s2332_s25 + $0x380] sm:$0xff] %v1310_v4  ;;  %v1316_v12 = vld [vmem:[%s2137_s9 + $0x1d8] sm:$0xff] }
 0x1c1   : > { %1313 = vst [vmem:[%s2332_s25 + $0x388] sm:$0xff] %v1312_v8  ;;  %1315 = vst [vmem:[%s2332_s25 + $0x390] sm:$0xff] %v1314_v11  ;;  %v1318_v14 = vld [vmem:[%s2137_s9 + $0x1e0] sm:$0xff] }
 0x1c2   : > { %1317 = vst [vmem:[%s2332_s25 + $0x398] sm:$0xff] %v1316_v12  ;;  %v1322_v45 = vld [vmem:[%s2137_s9 + $0x1f0] sm:$0xff]  ;;  %1319 = vst [vmem:[%s2332_s25 + $0x3c0] sm:$0xff] %v1318_v14 }
 0x1c3   : > { %v1320_v15 = vld [vmem:[%s2137_s9 + $0x1e8] sm:$0xff]  ;;  %1323 = vst [vmem:[%s2332_s25 + $0x3d0] sm:$0xff] %v1322_v45 }
 0x1c4   : > { %1321 = vst [vmem:[%s2332_s25 + $0x3c8] sm:$0xff] %v1320_v15  ;;  %v1324_v16 = vld [vmem:[%s2137_s9 + $0x1f8] sm:$0xff] }
 0x1c5   : > { %1325 = vst [vmem:[%s2332_s25 + $0x3d8] sm:$0xff] %v1324_v16 }
 0x1c6 PF: > { %s12_s15 = sadd.s32 1, %s1998_s15   ;;  %s2478_s9 = smov %s1978_s10 }
 0x1c7   : > { %p9_p11 = scmp.ge.s32.totalorder %s12_s15, 8   ;;  %s2479_s10 = smov %s2072_s24 }
 0x1c8   : > { %s2480_s11 = smov %s1990_s13  ;;  %s2481_s12 = smov %s1994_s14 }
 0x1c9   : > { %s2482_s13 = smov %s2485_s16  ;;  %s2483_s14 = smov %s2489_s17 }
 0x1ca   :  { %11 = sbr.rel (!%p9_p11) target bundleno = 4 (0x4), region = 84 }

</bundles_post_ra>
